<compile_context>
chip_gen: v7x
topology: tpu7x:2x2x1
jax: 0.10.0
libtpu: 0.0.40
codegen_flags: <defaults>
</compile_context>

<pallas_src>
import functools

import jax
import jax.numpy as jnp
from jax.experimental import pallas as pl
from jax.experimental.pallas import tpu as pltpu

OBS_SPACE = 8        # LunarLander-v2 observation dim
ACTION_SPACE = 4     # LunarLander-v2 action dim
HIDDEN = 64


def _cdiv(a, b):
    return -(-a // b)


def _round_up(x, m):
    return _cdiv(x, m) * m


def actor_critic_kernel(x_ref, w1_ref, b1_ref, w2t_ref, b2t_ref, w3t_ref,
                        b3t_ref, pi_ref, v_ref):
    # first_layer: Linear(obs, 64) + ReLU in natural [TB, obs] layout.  The
    # (TB, 8) block covers the full last dim, so its HBM read is one
    # contiguous TB*32 B chunk per tile.
    x = x_ref[...]                                                  # [TB, 8]
    h = jnp.dot(x, w1_ref[...], preferred_element_type=jnp.float32)
    h = jnp.maximum(h + b1_ref[...], 0.0)                           # [TB, 64]

    # Heads in batch-on-lanes (transposed) form so the result, the softmax
    # epilogue and the stores are all lane-dense:
    #   z[o, b] = sum_k w_t[o, k] * h[b, k]     (flash q @ k^T contraction)
    dims = (((1,), (1,)), ((), ()))
    logits_t = jax.lax.dot_general(w2t_ref[...], h, dims,
                                   preferred_element_type=jnp.float32)
    logits_t = logits_t + b2t_ref[...]                              # [4, TB]
    v_t = jax.lax.dot_general(w3t_ref[...], h, dims,
                              preferred_element_type=jnp.float32)
    v_t = v_t + b3t_ref[...]                                        # [1, TB]

    # Exact softmax over the 4 action rows (sublane-axis reduce).  No masking,
    # no approximate reciprocal -> probabilities sum to 1 at f32 precision.
    m = jnp.max(logits_t, axis=0, keepdims=True)                    # [1, TB]
    e = jnp.exp(logits_t - m)                                       # [4, TB]
    pi_ref[...] = e / jnp.sum(e, axis=0, keepdims=True)
    v_ref[...] = v_t


@functools.partial(jax.jit, static_argnames=("tb",))
def _forward_impl(state, w1, b1, w2_t, b2_t, w3_t, b3_t, *, tb):
    b = state.shape[0]
    bp = _round_up(b, tb)
    if bp != b:
        state = jnp.pad(state, ((0, bp - b), (0, 0)))
    grid = (bp // tb,)

    pi_t, v_t = pl.pallas_call(
        actor_critic_kernel,
        out_shape=(
            jax.ShapeDtypeStruct((ACTION_SPACE, bp), jnp.float32),  # pi^T
            jax.ShapeDtypeStruct((1, bp), jnp.float32),             # v
        ),
        grid=grid,
        in_specs=[
            # state: streamed per batch tile (contiguous HBM rows).
            # TODO(synk): if callers can hold bf16 state, feed it directly
            # (halves input DMA bytes); the f32 accumulate is unchanged.
            pl.BlockSpec((tb, OBS_SPACE), lambda i: (i, 0)),
            # weights / biases: constant index_map -> fetched once, VMEM-resident.
            pl.BlockSpec((OBS_SPACE, HIDDEN), lambda i: (0, 0)),     # w1  [8,64]
            pl.BlockSpec((1, HIDDEN), lambda i: (0, 0)),             # b1  [1,64]
            pl.BlockSpec((ACTION_SPACE, HIDDEN), lambda i: (0, 0)),  # w2^T[4,64]
            pl.BlockSpec((ACTION_SPACE, 1), lambda i: (0, 0)),       # b2^T[4,1]
            pl.BlockSpec((1, HIDDEN), lambda i: (0, 0)),             # w3^T[1,64]
            pl.BlockSpec((1, 1), lambda i: (0, 0)),                  # b3^T[1,1]
        ],
        out_specs=(
            # Lane-dense outputs: last dim = tb (multiple of 128) -> unmasked,
            # contiguous-row stores instead of masked last-dim-8 stores.
            pl.BlockSpec((ACTION_SPACE, tb), lambda i: (0, i)),
            pl.BlockSpec((1, tb), lambda i: (0, i)),
        ),
        compiler_params=pltpu.CompilerParams(
            # Batch axis is parallel -> sharded across both TensorCores on v7x.
            dimension_semantics=("parallel",),
        ),
    )(state, w1, b1, w2_t, b2_t, w3_t, b3_t)

    # Un-pad inside the same jit so these cheap leading-row slices fuse with
    # downstream consumers instead of forcing an extra HBM pass.
    return pi_t[:, :b], v_t[0, :b]


def _choose_tile(b, tb_max):
    """Pick the batch tile (multiple of 128).

    tb_max=4096 keeps double-buffered VMEM use around ~7 MiB, inside v5e's
    16 MiB and v7x's 32 MiB default scoped-VMEM budgets (v7x has only 64 MiB
    physical).  Raise tb_max only together with
    pltpu.CompilerParams(vmem_limit_bytes=...).
    """
    tb_max = max(128, 128 * (int(tb_max) // 128))
    n = _cdiv(b, tb_max)
    if n < 2 and b > 128:
        n = 2  # v7x has 2 TensorCores: give the parallel axis >= 2 grid steps.
    return _round_up(_cdiv(b, n), 128)


def actor_critic_forward_packed(state, packed_params, tb_max=4096):
    """Perf-preferred entry point.

    Returns (pi_t, v) with pi_t shaped [ACTION_SPACE, B] (batch in lanes) and
    v shaped [B]; split/transpose at the consumer if it needs [B, A]."""
    tb = _choose_tile(state.shape[0], tb_max)
    return _forward_impl(state, *packed_params, tb=tb)


def actor_critic_forward(state, packed_params, tb_max=4096):
    """PyTorch-shape parity: returns (pi [B, A], v [B]) matching
    (Categorical(pi).probs, torch.squeeze(v))."""
    pi_t, v = actor_critic_forward_packed(state, packed_params, tb_max)
    return pi_t.T, v


def init_params(key):
    """Deterministic init mirroring PyTorch's default Linear init:
    U(-1/sqrt(fan_in), 1/sqrt(fan_in)) for both weights and biases."""
    def linear(key, fan_in, fan_out):
        kw, kb = jax.random.split(key)
        bound = 1.0 / jnp.sqrt(jnp.float32(fan_in))
        w = jax.random.uniform(kw, (fan_in, fan_out), jnp.float32, -bound, bound)
        b = jax.random.uniform(kb, (1, fan_out), jnp.float32, -bound, bound)
        return w, b

    k1, k2, k3 = jax.random.split(key, 3)
    w1, b1 = linear(k1, OBS_SPACE, HIDDEN)
    w2, b2 = linear(k2, HIDDEN, ACTION_SPACE)
    w3, b3 = linear(k3, HIDDEN, 1)
    return (w1, b1, w2, b2, w3, b3)


def pack_params(w1, b1, w2, b2, w3, b3):
    """Transpose the head weights/biases for the batch-in-lanes formulation."""
    return (w1, b1, w2.T, b2.T, w3.T, b3.T)


if __name__ == "__main__":
    key = jax.random.PRNGKey(0)
    pkey, skey = jax.random.split(key)
    raw_params = init_params(pkey)
    packed_params = pack_params(*raw_params)

    # Small demo shape: B=200 with tb_max=128 -> tb=128, padded batch 256,
    # grid=(2,) -> exercises the batch pipeline, padding, and the parallel axis.
    B = 200
    state = jax.random.normal(skey, (B, OBS_SPACE), jnp.float32)

    pi, v = actor_critic_forward(state, packed_params, tb_max=128)
    jax.block_until_ready((pi, v))

    # Pure-JAX reference of the PyTorch forward.
    w1, b1, w2, b2, w3, b3 = raw_params
    h_ref = jnp.maximum(state @ w1 + b1, 0.0)
    pi_ref = jax.nn.softmax(h_ref @ w2 + b2, axis=-1)
    v_ref = (h_ref @ w3 + b3)[:, 0]

    assert pi.shape == (B, ACTION_SPACE)
    assert v.shape == (B,)
    # Exact softmax -> rows sum to 1 at float precision.
    assert jnp.allclose(jnp.sum(pi, axis=-1), 1.0, atol=1e-4)
    # Loose-ish tolerances to cover MXU default-precision matmul differences.
    assert jnp.allclose(pi, pi_ref, atol=5e-3)
    assert jnp.allclose(v, v_ref, atol=5e-3, rtol=1e-2)

    # TODO(synk): torch.distributions.Categorical (sampling / log_prob /
    # entropy) has no Pallas equivalent; the kernel returns the probability
    # vector `pi` that parameterizes it.
    print("KERNEL_OK")
</pallas_src>

<mosaic_0001>
module attributes {stable_mosaic.version = 11 : i64} {
  func.func @actor_critic_kernel(%arg0: i32, %arg1: memref<128x8xf32, #tpu.memory_space<vmem>>, %arg2: memref<8x64xf32, #tpu.memory_space<vmem>>, %arg3: memref<1x64xf32, #tpu.memory_space<vmem>>, %arg4: memref<4x64xf32, #tpu.memory_space<vmem>>, %arg5: memref<4x1xf32, #tpu.memory_space<vmem>>, %arg6: memref<1x64xf32, #tpu.memory_space<vmem>>, %arg7: memref<1x1xf32, #tpu.memory_space<vmem>>, %arg8: memref<4x128xf32, #tpu.memory_space<vmem>>, %arg9: memref<1x128xf32, #tpu.memory_space<vmem>>) attributes {dimension_semantics = [#tpu.dimension_semantics<parallel>], iteration_bounds = array<i64: 2>, scalar_prefetch = 0 : i64, scratch_operands = 0 : i64, tpu.core_type = #tpu.core_type<tc>, window_params = [{transform_indices = @transform_0, window_bounds = array<i64: 128, 8>}, {pipeline_mode = #tpu.pipeline_mode<synchronous>, transform_indices = @transform_1, window_bounds = array<i64: 8, 64>}, {pipeline_mode = #tpu.pipeline_mode<synchronous>, transform_indices = @transform_2, window_bounds = array<i64: 1, 64>}, {pipeline_mode = #tpu.pipeline_mode<synchronous>, transform_indices = @transform_3, window_bounds = array<i64: 4, 64>}, {pipeline_mode = #tpu.pipeline_mode<synchronous>, transform_indices = @transform_4, window_bounds = array<i64: 4, 1>}, {pipeline_mode = #tpu.pipeline_mode<synchronous>, transform_indices = @transform_5, window_bounds = array<i64: 1, 64>}, {pipeline_mode = #tpu.pipeline_mode<synchronous>, transform_indices = @transform_6, window_bounds = array<i64: 1, 1>}, {transform_indices = @transform_7, window_bounds = array<i64: 4, 128>}, {transform_indices = @transform_8, window_bounds = array<i64: 1, 128>}]} {
    %c0 = arith.constant 0 : index
    %c0_0 = arith.constant 0 : index
    %0 = vector.load %arg1[%c0, %c0_0] : memref<128x8xf32, #tpu.memory_space<vmem>>, vector<128x8xf32>
    %c0_1 = arith.constant 0 : index
    %c0_2 = arith.constant 0 : index
    %1 = vector.load %arg2[%c0_1, %c0_2] : memref<8x64xf32, #tpu.memory_space<vmem>>, vector<8x64xf32>
    %cst = arith.constant dense<0.000000e+00> : vector<128x64xf32>
    %2 = tpu.matmul %0, %1, %cst {dimension_numbers = #tpu.dot_dimension_numbers<[1], [0], [0], [1], [0, 0, 1, 1], [], []>} : vector<128x8xf32>, vector<8x64xf32>, vector<128x64xf32> -> vector<128x64xf32>
    %c0_3 = arith.constant 0 : index
    %c0_4 = arith.constant 0 : index
    %3 = vector.load %arg3[%c0_3, %c0_4] : memref<1x64xf32, #tpu.memory_space<vmem>>, vector<1x64xf32>
    %4 = vector.broadcast %3 : vector<1x64xf32> to vector<128x64xf32>
    %5 = arith.addf %2, %4 : vector<128x64xf32>
    %cst_5 = arith.constant 0.000000e+00 : f32
    %6 = vector.broadcast %cst_5 : f32 to vector<128x64xf32>
    %7 = arith.maximumf %5, %6 : vector<128x64xf32>
    %c0_6 = arith.constant 0 : index
    %c0_7 = arith.constant 0 : index
    %8 = vector.load %arg4[%c0_6, %c0_7] : memref<4x64xf32, #tpu.memory_space<vmem>>, vector<4x64xf32>
    %cst_8 = arith.constant dense<0.000000e+00> : vector<4x128xf32>
    %9 = tpu.matmul %8, %7, %cst_8 {dimension_numbers = #tpu.dot_dimension_numbers<[1], [1], [0], [0], [0, 0, 1, 0], [], []>} : vector<4x64xf32>, vector<128x64xf32>, vector<4x128xf32> -> vector<4x128xf32>
    %c0_9 = arith.constant 0 : index
    %c0_10 = arith.constant 0 : index
    %10 = vector.load %arg5[%c0_9, %c0_10] : memref<4x1xf32, #tpu.memory_space<vmem>>, vector<4x1xf32>
    %11 = vector.broadcast %10 : vector<4x1xf32> to vector<4x128xf32>
    %12 = arith.addf %9, %11 : vector<4x128xf32>
    %c0_11 = arith.constant 0 : index
    %c0_12 = arith.constant 0 : index
    %13 = vector.load %arg6[%c0_11, %c0_12] : memref<1x64xf32, #tpu.memory_space<vmem>>, vector<1x64xf32>
    %cst_13 = arith.constant dense<0.000000e+00> : vector<1x128xf32>
    %14 = tpu.matmul %13, %7, %cst_13 {dimension_numbers = #tpu.dot_dimension_numbers<[1], [1], [0], [0], [0, 0, 1, 0], [], []>} : vector<1x64xf32>, vector<128x64xf32>, vector<1x128xf32> -> vector<1x128xf32>
    %c0_14 = arith.constant 0 : index
    %c0_15 = arith.constant 0 : index
    %15 = vector.load %arg7[%c0_14, %c0_15] : memref<1x1xf32, #tpu.memory_space<vmem>>, vector<1x1xf32>
    %16 = vector.broadcast %15 : vector<1x1xf32> to vector<1x128xf32>
    %17 = arith.addf %14, %16 : vector<1x128xf32>
    %cst_16 = arith.constant dense<0xFF800000> : vector<128xf32>
    %18 = vector.multi_reduction <maximumf>, %12, %cst_16 [0] : vector<4x128xf32> to vector<128xf32>
    %19 = vector.shape_cast %18 : vector<128xf32> to vector<1x128xf32>
    %20 = vector.broadcast %19 : vector<1x128xf32> to vector<4x128xf32>
    %21 = arith.subf %12, %20 : vector<4x128xf32>
    %22 = math.exp %21 : vector<4x128xf32>
    %cst_17 = arith.constant dense<0.000000e+00> : vector<128xf32>
    %23 = vector.multi_reduction <add>, %22, %cst_17 [0] : vector<4x128xf32> to vector<128xf32>
    %24 = vector.shape_cast %23 : vector<128xf32> to vector<1x128xf32>
    %25 = vector.broadcast %24 : vector<1x128xf32> to vector<4x128xf32>
    %26 = arith.divf %22, %25 : vector<4x128xf32>
    %c0_18 = arith.constant 0 : index
    %c0_19 = arith.constant 0 : index
    %27 = vector.load %arg8[%c0_18, %c0_19] : memref<4x128xf32, #tpu.memory_space<vmem>>, vector<4x128xf32>
    tpu.vector_store %arg8[%c0_18, %c0_19], %26 {strides = array<i32>} : memref<4x128xf32, #tpu.memory_space<vmem>>, vector<4x128xf32>,
    %c0_20 = arith.constant 0 : index
    %c0_21 = arith.constant 0 : index
    %28 = vector.load %arg9[%c0_20, %c0_21] : memref<1x128xf32, #tpu.memory_space<vmem>>, vector<1x128xf32>
    tpu.vector_store %arg9[%c0_20, %c0_21], %17 {strides = array<i32>} : memref<1x128xf32, #tpu.memory_space<vmem>>, vector<1x128xf32>,
    return
  }
  func.func @transform_0(%arg0: i32) -> (i32, i32) {
    %c0_i32 = arith.constant 0 : i32
    %c0_i32_0 = arith.constant 0 : i32
    return %arg0, %c0_i32 : i32, i32
  }
  func.func @transform_1(%arg0: i32) -> (i32, i32) {
    %c0_i32 = arith.constant 0 : i32
    %c0_i32_0 = arith.constant 0 : i32
    %c0_i32_1 = arith.constant 0 : i32
    return %c0_i32, %c0_i32_0 : i32, i32
  }
  func.func @transform_2(%arg0: i32) -> (i32, i32) {
    %c0_i32 = arith.constant 0 : i32
    %c0_i32_0 = arith.constant 0 : i32
    %c0_i32_1 = arith.constant 0 : i32
    return %c0_i32, %c0_i32_0 : i32, i32
  }
  func.func @transform_3(%arg0: i32) -> (i32, i32) {
    %c0_i32 = arith.constant 0 : i32
    %c0_i32_0 = arith.constant 0 : i32
    %c0_i32_1 = arith.constant 0 : i32
    return %c0_i32, %c0_i32_0 : i32, i32
  }
  func.func @transform_4(%arg0: i32) -> (i32, i32) {
    %c0_i32 = arith.constant 0 : i32
    %c0_i32_0 = arith.constant 0 : i32
    %c0_i32_1 = arith.constant 0 : i32
    return %c0_i32, %c0_i32_0 : i32, i32
  }
  func.func @transform_5(%arg0: i32) -> (i32, i32) {
    %c0_i32 = arith.constant 0 : i32
    %c0_i32_0 = arith.constant 0 : i32
    %c0_i32_1 = arith.constant 0 : i32
    return %c0_i32, %c0_i32_0 : i32, i32
  }
  func.func @transform_6(%arg0: i32) -> (i32, i32) {
    %c0_i32 = arith.constant 0 : i32
    %c0_i32_0 = arith.constant 0 : i32
    %c0_i32_1 = arith.constant 0 : i32
    return %c0_i32, %c0_i32_0 : i32, i32
  }
  func.func @transform_7(%arg0: i32) -> (i32, i32) {
    %c0_i32 = arith.constant 0 : i32
    %c0_i32_0 = arith.constant 0 : i32
    return %c0_i32, %arg0 : i32, i32
  }
  func.func @transform_8(%arg0: i32) -> (i32, i32) {
    %c0_i32 = arith.constant 0 : i32
    %c0_i32_0 = arith.constant 0 : i32
    return %c0_i32, %arg0 : i32, i32
  }
}

</mosaic_0001>

<bundles_post_ra>
// kernel: _forward_impl.1
= control target key start
LH: loop header
LB: loop body
LE: loop exit
PB: predicated region body
PF: predicated region fallthrough
CT: control target
= control target key end

     0   :  { %s1645_s0 = inlined_call_operand.vmem [shape: f32[256,8], index: 0, kind: input, shape index: {}]   ;;  %s1646_s1 = inlined_call_operand.vmem [shape: f32[8,64], index: 1, kind: input, shape index: {}]   ;;  %s1647_s2 = inlined_call_operand.vmem [shape: f32[1,64], index: 2, kind: input, shape index: {}]   ;;  %s1648_s3 = inlined_call_operand.vmem [shape: f32[4,64], index: 3, kind: input, shape index: {}]   ;;  %s1649_s4 = inlined_call_operand.vmem [shape: f32[4,1], index: 4, kind: input, shape index: {}]   ;;  %s1650_s5 = inlined_call_operand.vmem [shape: f32[1,64], index: 5, kind: input, shape index: {}]   ;;  %s1651_s6 = inlined_call_operand.<no memory space> [shape: f32[1,1], index: 6, kind: input, shape index: {}]   ;;  %s1652_s7 = inlined_call_operand.hbm [shape: f32[4,256], index: 7, kind: output, shape index: {0}]   ;;  %s1653_s8 = inlined_call_operand.hbm [shape: f32[1,256], index: 8, kind: output, shape index: {1}]  }
   0x1   :  { %v14_v0 = vstv %s1651_s6 }
   0x2   :  { %15 = vst [vmem:[#allocation2] sm:$0x1] %v14_v0 }
   0x3   :  { %16 = vsyncpa [#allocation4], 0 }
   0x4   :  { %18 = vsyncpa [#allocation4 + $0x1], 0 }
   0x5   :  { %19 = vsyncpa [#allocation6], 0 }
   0x6   :  { %21 = vsyncpa [#allocation6 + $0x1], 0  ;;  %s1382_s29 = smov 0   ;;  %s1384_s30 = smov 0  }
   0x7   :  { %s1386_s9 = smov 0   ;;  %s1388_s10 = smov 0  }
   0x8 LB: > { %s1403_s6 = sadd.s32 4294967295, %s1326_s10   ;;  %s905_s11 = sadd.s32 4294967294, %s1326_s10   ;;  %s1326_s10 = sphi %s1388_s10, %s1661_s10   ;;  %s1322_s9 = sphi %s1386_s9, %s1660_s9   ;;  %s1318_s30 = sphi %s1384_s30, %s1659_s30   ;;  %s1314_s29 = sphi %s1382_s29, %s1658_s29  }
   0x9   : > { %s1407_s12 = sadd.s32 1, %s1326_s10   ;;  %s186_s13 = sadd.s32 1, %s1322_s9 }
   0xa   : > { %s183_s14 = ssub.s32 %s1326_s10, %s1407_s12  ;;  %p196_p0 = scmp.ne.s32.totalorder %s1322_s9, %s1318_s30 }
   0xb   : > { %p184_p1 = scmp.eq.s32.totalorder %s183_s14, 0  ;;  %p197_p2 = scmp.eq.s32.totalorder %s1403_s6, 1 }
   0xc   : > { %p202_p3 = scmp.ne.s32.totalorder %s1318_s30, %s1314_s29  ;;  %p203_p4 = scmp.eq.s32.totalorder %s905_s11, 1 }
   0xd   : > { %s1418_s15 = scalar_select %p184_p1, %s1322_s9, %s186_s13  }
   0xe   : > { %p1420_p5 = por %p197_p2, %p196_p0  ;;  %p1424_p6 = por %p203_p4, %p202_p3 }
   0xf   : > { %p908_p7 = scmp.ge.s32.totalorder %s1326_s10, 1  ;;  %p274_p8 = scmp.lt.s32.totalorder %s1326_s10, 3 }
  0x11   : > { %p275_p9 = pnand %p908_p7, %p274_p8 }
  0x12   : > { %v334_v1 = vld [vmem:[%s1646_s1] sm:$0xff] (!%p275_p9)  ;;  %s1434_s20 = sshll.u32 (!%p275_p9), %s1403_s6, 4  ;;  %vm342_vm0 = vcmask (!%p275_p9), 64512   ;;  %v1328_v18 = vmov (!%p275_p9), 0.0|0.0   ;;  %vm1329_vm1 = vmmov (!%p275_p9), 0   ;;  %v1330_v19 = vmov (!%p275_p9), 0.0  }
  0x13   : > { %278 = sbr.rel (%p275_p9) target bundleno = 607 (0x25f), region = 48  ;;  %1019 = vmatprep.subr.mxu0 (!%p275_p9), %v334_v1  ;;  %p313_p10 = scmp.lt.s32.totalorder (!%p275_p9), %s1434_s20, 31  ;;  %1115 = vmatprep.subr.bf16.mxu1 (!%p275_p9), %v1328_v18  ;;  %v553_v20 = vld [vmem:[%s1649_s4] sm:$0xf] (!%p275_p9)  ;;  %v1331_v21 = vmov (!%p275_p9), 0   ;;  %vm559_vm2 = vcmask (!%p275_p9), 523264  }
  0x14   : > { %1020 = vmatpush3.msra.mxu0 (!%p275_p9), %v334_v1  ;;  %1077 = vmatprep.mubr.msk.f32.mxu1 (!%p275_p9), %vm1329_vm1, %v1330_v19  ;;  %v682_v22 = vld [vmem:[#allocation2] sm:$0x1] (!%p275_p9)  ;;  %vm1490_vm3 = vmpackc.low (!%p275_p9), %vm559_vm2, %vm559_vm2  ;;  %vm765_vm4 = vcmask (!%p275_p9), 1043456   ;;  %s1569_s26 = scalar_lea.hbm (!%p275_p9), %s1653_s8, %s1434_s20  ;;  %s1332_s11 = smov (!%p275_p9), [#allocation5]  }
  0x15   : > { %1147 = vmatprep.subr.bf16.mxu0 (!%p275_p9), %v1328_v18  ;;  %1227 = vset.pattern.permute.xlu0 (!%p275_p9), %v1331_v21  ;;  %v1483_v23 = vld [vmem:[%s1647_s2] ss:$0 sm:$0xff] (!%p275_p9)  ;;  %s1236_s13 = sshll.u32 (!%p275_p9), %s1332_s11, 4  ;;  %s1237_s13 = int_to_ptr.vmem [resolvable:$false] %s1236_s13 }
  0x16   : > { %556 = vperm.xlu0 (!%p275_p9), %1227, %v553_v20   ;;  %v688_v20 = vlaneseq (!%p275_p9) }
  0x18   : > { %v689_v21 = vshrl.u32 (!%p275_p9), %v688_v20, 7 }
  0x1a   : > { %s314_s21 = scalar_select %p313_p10, %s1434_s20, 31  ;;  %685 = vperm.xlu0 %1227, %v682_v22   ;;  %v690_v22 = vsub.s32 0, %v689_v21 }
  0x1b   : > { %s1238_s20 = scalar_lea.vmem %s1237_s13, 32 }
  0x1c   : > { %s911_s22 = sshll.u32 %s314_s21, 3  ;;  %s1562_s21 = sand.u32 1, %s1318_s30  }
  0x1d   : > { %s1441_s25 = scalar_lea.vmem %s1645_s0, %s911_s22  ;;  %s311_s22 = scalar_lea.vmem [#allocation5], %s1562_s21 }
  0x1e   : > { %v318_v2 = vld [vmem:[%s1441_s25] sm:$0xff]  ;;  %v319_v3 = vld [vmem:[%s1441_s25 + $0x8] sm:$0xff]  ;;  %v320_v4 = vld [vmem:[%s1441_s25 + $0x10] sm:$0xff]  ;;  %s818_s23 = sshll.u32 %s311_s22, 4  ;;  %s793_s27 = scalar_lea.sflag [#allocation6], %s1562_s21  ;;  %s1571_s23 = int_to_ptr.vmem [resolvable:$true] %s818_s23 }
  0x1f   : > { %1021 = vmatprep.mubr.msk.f32.mxu0 %vm342_vm0, %v318_v2  ;;  %v321_v5 = vld [vmem:[%s1441_s25 + $0x18] sm:$0xff]  ;;  %v322_v6 = vld [vmem:[%s1441_s25 + $0x20] sm:$0xff]  ;;  %v323_v7 = vld [vmem:[%s1441_s25 + $0x28] sm:$0xff]  ;;  %s1232_s28 = scalar_lea.vmem %s1571_s23, 16  ;;  %p1239_p0 = scmp.lt.s32.totalorder %s1571_s23, %s1237_s13 }
  0x20   : > { %1022 = vmatmul.mubr.msk.f32.vlgmr.msra.gmra.mrb[0].mxu0 %vm342_vm0, %v319_v3  ;;  %v324_v8 = vld [vmem:[%s1441_s25 + $0x30] sm:$0xff]  ;;  %v325_v9 = vld [vmem:[%s1441_s25 + $0x38] sm:$0xff]  ;;  %v326_v10 = vld [vmem:[%s1441_s25 + $0x40] sm:$0xff]  ;;  %p1233_p11 = scmp.ne.s32.totalorder %s1571_s23, %s1232_s28  ;;  %p1240_p1 = scmp.lt.s32.totalorder %s1238_s20, %s1232_s28 }
  0x21   : > { %1024 = vmatprep.mubr.msk.f32.mxu0 %vm342_vm0, %v320_v4  ;;  %v327_v11 = vld [vmem:[%s1441_s25 + $0x48] sm:$0xff]  ;;  %v328_v12 = vld [vmem:[%s1441_s25 + $0x50] sm:$0xff]  ;;  %v329_v13 = vld [vmem:[%s1441_s25 + $0x58] sm:$0xff] }
  0x22   : > { %v330_v14 = vld [vmem:[%s1441_s25 + $0x60] sm:$0xff]  ;;  %v331_v15 = vld [vmem:[%s1441_s25 + $0x68] sm:$0xff]  ;;  %v332_v16 = vld [vmem:[%s1441_s25 + $0x70] sm:$0xff]  ;;  %p1234_p12 = pnand %p1233_p11, %p1420_p5  ;;  %p1241_p2 = por %p1240_p1, %p1239_p0 }
  0x23   : > { %v333_v17 = vld [vmem:[%s1441_s25 + $0x78] sm:$0xff] }
  0x24   : > { %1025 = vmatmul.mubr.msk.f32.gmra.mrb[2].mxu0 %vm342_vm0, %v321_v5  ;;  %p1235_p13 = pneg %p1234_p12 }
  0x25   : > { %1027 = vmatprep.mubr.msk.f32.mxu0 %vm342_vm0, %v322_v6 }
  0x26   : > { %p1242_p3 = pnand %p1241_p2, %p1235_p13 }
  0x28   : > { %1028 = vmatmul.mubr.msk.f32.gmra.mrb[4].mxu0 %vm342_vm0, %v323_v7 }
  0x29   : > { %1030 = vmatprep.mubr.msk.f32.mxu0 %vm342_vm0, %v324_v8 }
  0x2c   : > { %1031 = vmatmul.mubr.msk.f32.gmra.mrb[6].mxu0 %vm342_vm0, %v325_v9 }
  0x2d   : > { %1033 = vmatprep.mubr.msk.f32.mxu0 %vm342_vm0, %v326_v10 }
  0x30   : > { %1034 = vmatmul.mubr.msk.f32.gmra.mrb[8].mxu0 %vm342_vm0, %v327_v11 }
  0x31   : > { %1036 = vmatprep.mubr.msk.f32.mxu0 %vm342_vm0, %v328_v12 }
  0x34   : > { %1037 = vmatmul.mubr.msk.f32.gmra.mrb[10].mxu0 %vm342_vm0, %v329_v13 }
  0x35   : > { %1039 = vmatprep.mubr.msk.f32.mxu0 %vm342_vm0, %v330_v14 }
  0x38   : > { %1040 = vmatmul.mubr.msk.f32.gmra.mrb[12].mxu0 %vm342_vm0, %v331_v15 }
  0x39   : > { %1042 = vmatprep.mubr.msk.f32.mxu0 %vm342_vm0, %v332_v16 }
  0x3c   : > { %1043 = vmatmul.mubr.msk.f32.gmra.mrb[14].mxu0 %vm342_vm0, %v333_v17  ;;  %v552_v17 = vld [vmem:[%s1648_s3] sm:$0xf] }
  0x3d   : > { %1112 = vmatprep.mubr.msk.f32.mxu0 %vm1329_vm1, %v1330_v19  ;;  %v681_v19 = vld [vmem:[%s1650_s5] sm:$0x1] }
  0xf3   : > { %v1023_v24 = vpop.f32.mrb[0].mxu0 }
  0xf4   : > { %v463_v25 = vadd.f32 %v1023_v24, %v1483_v23  ;;  %v457_v26 = vpop.f32.mrb[1].mxu0 }
  0xf5   : > { %v458_v27 = vadd.f32 %v1483_v23, %v457_v26 }
  0xf6   : > { %v537_v28 = vmax.f32 %v463_v25, 0.0 }
  0xf7   : > { %v536_v29 = vmax.f32 %v458_v27, 0.0  ;;  %v1026_v30 = vpop.f32.mrb[2].mxu0 }
  0xf8   : > { %v473_v31 = vadd.f32 %v1026_v30, %v1483_v23  ;;  %v467_v32 = vpop.f32.mrb[3].mxu0 }
  0xf9   : > { %v1116_v34 = vpack.c.bf16 %v537_v28, %v536_v29  ;;  %v468_v35 = vadd.f32 %v1483_v23, %v467_v32 }
  0xfa   : > { %v539_v36 = vmax.f32 %v473_v31, 0.0 }
  0xfb   : > { %v538_v37 = vmax.f32 %v468_v35, 0.0  ;;  %1118 = vmatpush3.bf16.xpose.msk.msra.mxu1 %vm1490_vm3, %v1116_v34  ;;  %1150 = vmatpush3.bf16.xpose.msk.msra.mxu0 %vm1490_vm3, %v1116_v34  ;;  %v1029_v38 = vpop.f32.mrb[4].mxu0 }
  0xfc   : > { %v483_v39 = vadd.f32 %v1029_v38, %v1483_v23  ;;  %1119 = vmatprep.subr.bf16.mxu1 %v1328_v18  ;;  %1151 = vmatprep.subr.bf16.mxu0 %v1328_v18  ;;  %v477_v40 = vpop.f32.mrb[5].mxu0 }
  0xfd   : > { %v1120_v41 = vpack.c.bf16 %v539_v36, %v538_v37  ;;  %v478_v42 = vadd.f32 %v1483_v23, %v477_v40 }
  0xfe   : > { %v541_v43 = vmax.f32 %v483_v39, 0.0 }
  0xff   : > { %v540_v44 = vmax.f32 %v478_v42, 0.0  ;;  %v1032_v45 = vpop.f32.mrb[6].mxu0 }
 0x100   : > { %v493_v46 = vadd.f32 %v1032_v45, %v1483_v23  ;;  %v487_v47 = vpop.f32.mrb[7].mxu0 }
 0x101   : > { %v1124_v48 = vpack.c.bf16 %v541_v43, %v540_v44  ;;  %v488_v49 = vadd.f32 %v1483_v23, %v487_v47 }
 0x102   : > { %v543_v50 = vmax.f32 %v493_v46, 0.0 }
 0x103   : > { %1122 = vmatpush3.bf16.xpose.msk.msra.mxu1 %vm1490_vm3, %v1120_v41  ;;  %1154 = vmatpush3.bf16.xpose.msk.msra.mxu0 %vm1490_vm3, %v1120_v41  ;;  %v542_v51 = vmax.f32 %v488_v49, 0.0  ;;  %v1035_v52 = vpop.f32.mrb[8].mxu0 }
 0x104   : > { %1123 = vmatprep.subr.bf16.mxu1 %v1328_v18  ;;  %1155 = vmatprep.subr.bf16.mxu0 %v1328_v18  ;;  %v503_v53 = vadd.f32 %v1035_v52, %v1483_v23  ;;  %v497_v54 = vpop.f32.mrb[9].mxu0 }
 0x105   : > { %v1128_v55 = vpack.c.bf16 %v543_v50, %v542_v51  ;;  %v498_v56 = vadd.f32 %v1483_v23, %v497_v54 }
 0x106   : > { %v545_v57 = vmax.f32 %v503_v53, 0.0 }
 0x107   : > { %v544_v58 = vmax.f32 %v498_v56, 0.0  ;;  %v1038_v59 = vpop.f32.mrb[10].mxu0 }
 0x108   : > { %v513_v60 = vadd.f32 %v1038_v59, %v1483_v23  ;;  %v507_v61 = vpop.f32.mrb[11].mxu0 }
 0x109   : > { %v1132_v62 = vpack.c.bf16 %v545_v57, %v544_v58  ;;  %v508_v63 = vadd.f32 %v1483_v23, %v507_v61 }
 0x10a   : > { %v547_v0 = vmax.f32 %v513_v60, 0.0 }
 0x10b   : > { %1126 = vmatpush3.bf16.xpose.msk.msra.mxu1 %vm1490_vm3, %v1124_v48  ;;  %1158 = vmatpush3.bf16.xpose.msk.msra.mxu0 %vm1490_vm3, %v1124_v48  ;;  %v546_v1 = vmax.f32 %v508_v63, 0.0  ;;  %v1041_v2 = vpop.f32.mrb[12].mxu0 }
 0x10c   : > { %1127 = vmatprep.subr.bf16.mxu1 %v1328_v18  ;;  %1159 = vmatprep.subr.bf16.mxu0 %v1328_v18  ;;  %v523_v3 = vadd.f32 %v1041_v2, %v1483_v23  ;;  %v517_v4 = vpop.f32.mrb[13].mxu0 }
 0x10d   : > { %v1136_v5 = vpack.c.bf16 %v547_v0, %v546_v1  ;;  %v518_v6 = vadd.f32 %v1483_v23, %v517_v4 }
 0x10e   : > { %v549_v7 = vmax.f32 %v523_v3, 0.0 }
 0x10f   : > { %v548_v8 = vmax.f32 %v518_v6, 0.0  ;;  %v1044_v9 = vpop.f32.mrb[14].mxu0 }
 0x110   : > { %v533_v10 = vadd.f32 %v1044_v9, %v1483_v23  ;;  %v527_v11 = vpop.f32.mrb[15].mxu0 }
 0x111   : > { %v1140_v12 = vpack.c.bf16 %v549_v7, %v548_v8  ;;  %v528_v13 = vadd.f32 %v1483_v23, %v527_v11 }
 0x112   : > { %v551_v14 = vmax.f32 %v533_v10, 0.0 }
 0x113   : > { %1130 = vmatpush3.bf16.xpose.msk.msra.mxu1 %vm1490_vm3, %v1128_v55  ;;  %1162 = vmatpush3.bf16.xpose.msk.msra.mxu0 %vm1490_vm3, %v1128_v55  ;;  %v550_v15 = vmax.f32 %v528_v13, 0.0 }
 0x114   : > { %1131 = vmatprep.subr.bf16.mxu1 %v1328_v18  ;;  %1163 = vmatprep.subr.bf16.mxu0 %v1328_v18 }
 0x115   : > { %v1144_v16 = vpack.c.bf16 %v551_v14, %v550_v15 }
 0x11b   : > { %1134 = vmatpush3.bf16.xpose.msk.msra.mxu1 %vm1490_vm3, %v1132_v62  ;;  %1166 = vmatpush3.bf16.xpose.msk.msra.mxu0 %vm1490_vm3, %v1132_v62 }
 0x11c   : > { %1135 = vmatprep.subr.bf16.mxu1 %v1328_v18  ;;  %1167 = vmatprep.subr.bf16.mxu0 %v1328_v18 }
 0x123   : > { %1138 = vmatpush3.bf16.xpose.msk.msra.mxu1 %vm1490_vm3, %v1136_v5  ;;  %1170 = vmatpush3.bf16.xpose.msk.msra.mxu0 %vm1490_vm3, %v1136_v5 }
 0x124   : > { %1139 = vmatprep.subr.bf16.mxu1 %v1328_v18  ;;  %1171 = vmatprep.subr.bf16.mxu0 %v1328_v18 }
 0x12b   : > { %1142 = vmatpush3.bf16.xpose.msk.msra.mxu1 %vm1490_vm3, %v1140_v12  ;;  %1174 = vmatpush3.bf16.xpose.msk.msra.mxu0 %vm1490_vm3, %v1140_v12 }
 0x12c   : > { %1143 = vmatprep.subr.bf16.mxu1 %v1328_v18  ;;  %1175 = vmatprep.subr.bf16.mxu0 %v1328_v18  ;;  %v557_v18 = vpop.permute.xlu0 %556 }
 0x130   : > { %v686_v23 = vpop.permute.xlu0 %685 }
 0x131   : > { %v691_v24 = vrot.slane %v686_v23, %v690_v22 }
 0x133   : > { %1146 = vmatpush3.bf16.xpose.msk.msra.mxu1 %vm1490_vm3, %v1144_v16  ;;  %1178 = vmatpush3.bf16.xpose.msk.msra.mxu0 %vm1490_vm3, %v1144_v16 }
 0x13a   : > { %1078 = vmatmul.mubr.msk.f32.vlgmr.msra.gmra.mrb[0].mxu1 %vm559_vm2, %v552_v17  ;;  %1113 = vmatmul.mubr.msk.f32.vlgmr.msra.gmra.mrb[16].mxu0 %vm559_vm2, %v681_v19 }
 0x20d   : > { %v677_v25 = vpop.f32.mrb[0].mxu1  ;;  %v761_v26 = vpop.f32.mrb[16].mxu0 }
 0x20e   : > { %v678_v27 = vadd.f32 %v677_v25, %v557_v18  ;;  %v1079_v28 = vpop.f32.mrb[1].mxu1  ;;  %v762_v29 = vadd.f32 %v761_v26, %v691_v24  ;;  %v1114_v30 = vpop.f32.mrb[17].mxu0 }
 0x210   : > { %v766_v31 = vsel %vm765_vm4, %v678_v27, -inf  ;;  %786 = vst [vmem:[%s311_s22] sm:$0x1] %v762_v29 }
 0x211   : > { %v767_v32 = vrot.slane %v766_v31, 4 }
 0x212   : > { %1245 = shalt.err (!%p1242_p3)
}
 0x213   : > { %s1246_s14 = scalar_lea.hbm %s1569_s26, 16  ;;  %s1250_s22 = scalar_lea.hbm %s1653_s8, 32 }
 0x214   : > { %p1247_p4 = scmp.ne.s32.totalorder %s1569_s26, %s1246_s14  ;;  %p1251_p9 = scmp.lt.u32.totalorder %s1569_s26, %s1653_s8 }
 0x215   : > { %p1252_p10 = scmp.lt.u32.totalorder %s1250_s22, %s1246_s14  ;;  %p1254_p12 = scmp.lt.u32.totalorder %s1246_s14, %s1569_s26 }
 0x216   : > { %p1248_p7 = pnand %p1247_p4, %p1420_p5 }
 0x217   : > { %p1253_p11 = por %p1252_p10, %p1251_p9 }
 0x218   : > { %p1249_p8 = pneg %p1248_p7 }
 0x219   : > { %p1255_p13 = por %p1254_p12, %p1253_p11 }
 0x21b   : > { %p1256_p0 = pnand %p1255_p13, %p1249_p8 }
 0x21d   : > { %1259 = shalt.err (!%p1256_p0)
}
 0x21e   : > { %1180 = dma.vmem_to_hbm [thread:$0]  (%p1420_p5), %s1571_s23, 16, %s1569_s26, %s793_s27   ;;  %v768_v33 = vmax.f32 %v766_v31, %v767_v32 }
 0x21f   : > { %s909_s23 = sshll.u32 %s1562_s21, 2  ;;  %s964_s26 = sshll.u32 %s1403_s6, 6 }
 0x220   : > { %v769_v34 = vrot.slane %v768_v33, 2  ;;  %s305_s27 = scalar_lea.vmem [#allocation3], %s909_s23  ;;  %s1602_s20 = scalar_lea.hbm %s1652_s7, %s964_s26 }
 0x221   : > { %s805_s28 = sshll.u32 %s305_s27, 4  ;;  %s788_s14 = scalar_lea.sflag [#allocation4], %s1562_s21  ;;  %s1604_s28 = int_to_ptr.vmem [resolvable:$true] %s805_s28 }
 0x222   : > { %v770_v35 = vmax.f32 %v768_v33, %v769_v34  ;;  %s1260_s18 = scalar_lea.vmem %s1604_s28, 64  ;;  %s1333_s6 = smov [#allocation3]  }
 0x223   : > { %p1261_p1 = scmp.ne.s32.totalorder %s1604_s28, %s1260_s18  ;;  %s1264_s19 = sshll.u32 %s1333_s6, 4  ;;  %s1265_s19 = int_to_ptr.vmem [resolvable:$false] %s1264_s19 }
 0x224   : > { %v771_v36 = vrot.slane %v770_v35, 1  ;;  %s1266_s22 = scalar_lea.vmem %s1265_s19, 128  ;;  %p1267_p4 = scmp.lt.s32.totalorder %s1604_s28, %s1265_s19 }
 0x225   : > { %p1262_p2 = pnand %p1261_p1, %p1420_p5  ;;  %p1268_p7 = scmp.lt.s32.totalorder %s1266_s22, %s1260_s18 }
 0x226   : > { %v772_v37 = vmax.f32 %v770_v35, %v771_v36 }
 0x227   : > { %p1263_p3 = pneg %p1262_p2  ;;  %p1269_p8 = por %p1268_p7, %p1267_p4 }
 0x228   : > { %v773_v38 = vsub.f32 %v678_v27, %v772_v37 }
 0x229   : > { %p1270_p9 = pnand %p1269_p8, %p1263_p3 }
 0x22a   : > { %v774_v39 = vmul.f32 1.442695, %v773_v38 }
 0x22c   : > { %1228 = vpow2.f32 %v774_v39 }
 0x236   : > { %v1229_v40 = vpop.eup %1228 }
 0x237   : > { %v776_v41 = vsel %vm765_vm4, %v1229_v40, 0.0 }
 0x238   : > { %v777_v42 = vrot.slane %v776_v41, 4 }
 0x23a   : > { %v778_v43 = vadd.f32 %v777_v42, %v776_v41 }
 0x23c   : > { %v779_v44 = vrot.slane %v778_v43, 2 }
 0x23e   : > { %v780_v45 = vadd.f32 %v779_v44, %v778_v43 }
 0x240   : > { %v781_v46 = vrot.slane %v780_v45, 1 }
 0x242   : > { %v782_v47 = vadd.f32 %v781_v46, %v780_v45 }
 0x244   : > { %1230 = vrcp.f32 %v782_v47 }
 0x24e   : > { %v1231_v48 = vpop.eup %1230 }
 0x24f   : > { %v784_v49 = vmul.f32 %v1231_v48, %v1229_v40 }
 0x251   : > { %785 = vst [vmem:[%s305_s27] sm:$0xf] %v784_v49 }
 0x252   : > { %1273 = shalt.err (!%p1270_p9)
}
 0x253   : > { %s1274_s21 = scalar_lea.hbm %s1602_s20, 64  ;;  %s1278_s23 = scalar_lea.hbm %s1652_s7, 128 }
 0x254   : > { %p1275_p10 = scmp.ne.s32.totalorder %s1602_s20, %s1274_s21  ;;  %p1279_p13 = scmp.lt.u32.totalorder %s1602_s20, %s1652_s7 }
 0x255   : > { %p1280_p0 = scmp.lt.u32.totalorder %s1278_s23, %s1274_s21  ;;  %p1282_p2 = scmp.lt.u32.totalorder %s1274_s21, %s1602_s20 }
 0x256   : > { %p1276_p11 = pnand %p1275_p10, %p1420_p5 }
 0x257   : > { %p1281_p1 = por %p1280_p0, %p1279_p13 }
 0x258   : > { %p1277_p12 = pneg %p1276_p11 }
 0x259   : > { %p1283_p3 = por %p1282_p2, %p1281_p1 }
 0x25b   : > { %p1284_p4 = pnand %p1283_p3, %p1277_p12 }
 0x25d   : > { %1287 = shalt.err (!%p1284_p4)
}
 0x25e   : > { %1179 = dma.vmem_to_hbm [thread:$0]  (%p1420_p5), %s1604_s28, 64, %s1602_s20, %s788_s14  }
 0x25f PF: > { %p1190_p7 = scmp.ge.s32.totalorder %s1326_s10, 2  ;;  %s830_s11 = sand.u32 1, %s1314_s29  }
 0x260   : > { %s831_s13 = scalar_lea.sflag [#allocation4], %s830_s11 }
 0x261   : > { %p1184_p8 = pnand %p1190_p7, %p1424_p6 }
 0x263   : > { %1305 = dma.done.wait (!%p1184_p8), %s831_s13, 64  }
 0x264   : > { %1307 = vsyncadd (!%p1184_p8), %s831_s13, 4294967232  ;;  %s840_s18 = scalar_lea.sflag [#allocation6], %s830_s11 }
 0x265   : > { %1309 = dma.done.wait (!%p1184_p8), %s840_s18, 16  }
 0x266   : > { %1311 = vsyncadd (!%p1184_p8), %s840_s18, 4294967280  ;;  %p24_p5 = scmp.ge.s32.totalorder %s1407_s12, 4   ;;  %s1658_s29 = smov %s1318_s30 }
 0x267   : > { %s1659_s30 = smov %s1322_s9  ;;  %s1660_s9 = smov %s1418_s15 }
 0x268   : > { %s1661_s10 = smov %s1407_s12  ;;  %26 = sbr.rel (!%p24_p5) target bundleno = 8 (0x8), region = 100 }
 0x26f   :  { %844 = vsyncpa [#allocation4], 1 }
 0x270   :  { %846 = vsyncpa [#allocation4 + $0x1], 1 }
 0x271   :  { %847 = vsyncpa [#allocation6], 1 }
 0x272   :  { %849 = vsyncpa [#allocation6 + $0x1], 1 }

</bundles_post_ra>
